<compile_context>
chip_gen: v5e
topology: v5e:2x2
jax: 0.10.0
libtpu: 0.0.40
codegen_flags: <defaults>
</compile_context>

<pallas_src>
import functools

import numpy as np
import jax
import jax.numpy as jnp
from jax.experimental import pallas as pl
from jax.experimental.pallas import tpu as pltpu


def _round_up(x, m):
    return ((x + m - 1) // m) * m


def _bce_dice_kernel(pr_ref, gt_ref, ones_ref,
                     inter_ref, strue_ref, spred_ref, bce_ref,
                     *, n_lanes, lane_tile, lanes_ragged):
    # pr_ref / gt_ref: (tr, tl) tile of the (R, L) slab.
    # ones_ref:        (tl, 1) column of ones, same block every step (resident).
    # *_ref outputs:   (tr, 1) per-row partials; they double as accumulators
    #                  because their block index is constant along the lane axis.
    k = pl.program_id(1)          # lane/reduction step -- top level only.

    @pl.when(k == 0)
    def _():
        inter_ref[...] = jnp.zeros_like(inter_ref)
        strue_ref[...] = jnp.zeros_like(strue_ref)
        spred_ref[...] = jnp.zeros_like(spred_ref)
        bce_ref[...] = jnp.zeros_like(bce_ref)

    # Cast to f32 on load (inputs may be bf16 / low precision at the boundary).
    x = pr_ref[...].astype(jnp.float32)   # logits
    y = gt_ref[...].astype(jnp.float32)   # targets in [0, 1]

    # sigmoid(x) > 0.5  <=>  x > 0 (strict), as a float mask used twice.
    pos_f = (x > 0.0).astype(jnp.float32)

    # Stable BCEWithLogits: max(x,0) - x*y + log1p(exp(-|x|))   (EUP chain)
    bce_el = jnp.maximum(x, 0.0) - x * y + jnp.log1p(jnp.exp(-jnp.abs(x)))

    if lanes_ragged:
        # Last lane block extends past L: zero out-of-range lanes with selects
        # (NaN/Inf-safe against whatever the boundary DMA left in the buffer).
        lane = k * lane_tile + jax.lax.broadcasted_iota(jnp.int32, x.shape, 1)
        valid = lane < n_lanes
        y = jnp.where(valid, y, 0.0)
        pos_f = jnp.where(valid, pos_f, 0.0)
        bce_el = jnp.where(valid, bce_el, 0.0)

    # Lane reductions on the MXU (idle otherwise): (tr, tl) @ (tl, 1).
    w = ones_ref[...]
    inter_ref[...] += jnp.dot(pos_f * y, w, preferred_element_type=jnp.float32)
    strue_ref[...] += jnp.dot(y, w, preferred_element_type=jnp.float32)
    spred_ref[...] += jnp.dot(pos_f, w, preferred_element_type=jnp.float32)
    bce_ref[...] += jnp.dot(bce_el, w, preferred_element_type=jnp.float32)


def bce_dice_loss_custom(y_pr, y_gt, *, tile_rows=512, tile_lanes=4096):
    """Pallas implementation of BCEDiceLossCustom.forward(y_pr, y_gt)."""
    B, C, H, W = y_pr.shape
    R = B * C          # one row per (batch, channel) image
    L = H * W          # pixels on the lane axis

    # Keep the native dtype at the boundary; cast inside the kernel.
    pr2 = y_pr.reshape(R, L)
    gt2 = y_gt.reshape(R, L)

    # (8,128)-legal tile sizes; no input padding (ragged boundary blocks are
    # masked in-kernel / sliced off in the epilogue).
    tr = min(_round_up(tile_rows, 8), _round_up(R, 8))
    tl = min(_round_up(tile_lanes, 128), _round_up(L, 128))

    # v7x has 2 TensorCores sharded over the "parallel" row axis; make sure
    # there are >= 2 row blocks whenever the row count allows it.
    if pl.cdiv(R, tr) == 1 and R >= 16:
        tr = _round_up(pl.cdiv(R, 2), 8)
    # TODO(synk): for R < 16 on v7x one core idles; splitting the lane axis
    # across cores with per-core partials would recover it.

    n_row_blocks = pl.cdiv(R, tr)
    n_lane_blocks = pl.cdiv(L, tl)
    lanes_ragged = (n_lane_blocks * tl != L)
    r_out = n_row_blocks * tr          # output rows (garbage rows sliced off)

    ones_col = jnp.ones((tl, 1), jnp.float32)

    kernel = functools.partial(
        _bce_dice_kernel, n_lanes=L, lane_tile=tl, lanes_ragged=lanes_ragged)

    row_out = jax.ShapeDtypeStruct((r_out, 1), jnp.float32)
    out_spec = pl.BlockSpec((tr, 1), lambda i, k: (i, 0))

    bytes_in = pr2.size * pr2.dtype.itemsize + gt2.size * gt2.dtype.itemsize
    cost = pl.CostEstimate(
        flops=18 * R * L,              # elementwise + 4 MXU row reductions
        transcendentals=2 * R * L,     # exp + log1p
        bytes_accessed=bytes_in + 4 * r_out * 4,
    )

    inter, s_true, s_pred, bce_rows = pl.pallas_call(
        kernel,
        out_shape=(row_out, row_out, row_out, row_out),
        grid_spec=pltpu.PrefetchScalarGridSpec(
            num_scalar_prefetch=0,
            grid=(n_row_blocks, n_lane_blocks),     # reduction axis last
            in_specs=[
                pl.BlockSpec((tr, tl), lambda i, k: (i, k)),
                pl.BlockSpec((tr, tl), lambda i, k: (i, k)),
                pl.BlockSpec((tl, 1), lambda i, k: (0, 0)),   # resident ones
            ],
            out_specs=(out_spec, out_spec, out_spec, out_spec),
        ),
        compiler_params=pltpu.CompilerParams(
            dimension_semantics=("parallel", "arbitrary"),
            vmem_limit_bytes=48 * 1024 * 1024,
        ),
        cost_estimate=cost,
    )(pr2, gt2, ones_col)

    # Tiny JAX epilogue over R rows: dice special case, divides, means.
    inter = inter[:R, 0]
    s_true = s_true[:R, 0]
    s_pred = s_pred[:R, 0]
    bce_rows = bce_rows[:R, 0]

    both_zero = jnp.logical_and(s_true == 0.0, s_pred == 0.0)
    denom = jnp.where(both_zero, 1.0, s_true + s_pred)
    dice = jnp.where(both_zero, 1.0, 2.0 * inter / denom)

    dice_loss = 1.0 - jnp.sum(dice) / float(R)
    bce = jnp.sum(bce_rows) / float(R * L)
    return dice_loss + bce


# ---------------------------------------------------------------------------
# numpy reference (mirrors the PyTorch module exactly) for a sanity check.
def _ref_bce_dice(y_pr, y_gt):
    y_pr = np.asarray(y_pr, np.float64)
    y_gt = np.asarray(y_gt, np.float64)
    B, C = y_pr.shape[:2]
    mean_dice = 0.0
    for i in range(B):
        for j in range(C):
            x = y_pr[i, j]
            t = y_gt[i, j]
            pb = (1.0 / (1.0 + np.exp(-x))) > 0.5
            inter = np.sum(t * pb)
            if np.sum(t) == 0 and np.sum(pb) == 0:
                d = 1.0
            else:
                d = 2.0 * inter / (np.sum(t) + np.sum(pb))
            mean_dice += d
    mean_dice /= (B * C)
    dice_loss = 1.0 - mean_dice
    bce = np.mean(np.maximum(y_pr, 0) - y_pr * y_gt + np.log1p(np.exp(-np.abs(y_pr))))
    return dice_loss + bce


if __name__ == "__main__":
    key = jax.random.PRNGKey(0)
    k1, k2, k3, k4, k5, k6 = jax.random.split(key, 6)

    # --- primary demo shape (aligned, single block) --------------------------
    B, C, H, W = 2, 4, 16, 16
    y_pr = jax.random.normal(k1, (B, C, H, W), dtype=jnp.float32)
    y_gt = jax.random.bernoulli(k2, 0.5, (B, C, H, W)).astype(jnp.float32)
    # Force one channel into the "both empty" special case of single_dice_coef.
    y_pr = y_pr.at[0, 0].set(-5.0)   # sigmoid < 0.5 everywhere -> pred all zero
    y_gt = y_gt.at[0, 0].set(0.0)    # ground truth all zero

    loss = jax.block_until_ready(bce_dice_loss_custom(y_pr, y_gt))
    ref = _ref_bce_dice(np.asarray(y_pr), np.asarray(y_gt))
    assert np.allclose(float(loss), ref, rtol=1e-5, atol=1e-5), (float(loss), ref)

    # --- ragged rows + ragged lanes + multi-step lane accumulation ------------
    B2, C2, H2, W2 = 1, 3, 48, 48        # R=3 (< 8), L=2304 (3 ragged lane blocks)
    y_pr2 = jax.random.normal(k3, (B2, C2, H2, W2), dtype=jnp.float32)
    y_gt2 = jax.random.bernoulli(k4, 0.3, (B2, C2, H2, W2)).astype(jnp.float32)

    loss2 = jax.block_until_ready(
        bce_dice_loss_custom(y_pr2, y_gt2, tile_rows=8, tile_lanes=1024))
    ref2 = _ref_bce_dice(np.asarray(y_pr2), np.asarray(y_gt2))
    assert np.allclose(float(loss2), ref2, rtol=1e-5, atol=1e-5), (float(loss2), ref2)

    # --- multi-row-block path (exercises the >=2 parallel row blocks split) ---
    B3, C3, H3, W3 = 4, 4, 8, 16          # R=16 -> split into 2 row blocks
    y_pr3 = jax.random.normal(k5, (B3, C3, H3, W3), dtype=jnp.float32)
    y_gt3 = jax.random.bernoulli(k6, 0.4, (B3, C3, H3, W3)).astype(jnp.float32)

    loss3 = jax.block_until_ready(bce_dice_loss_custom(y_pr3, y_gt3))
    ref3 = _ref_bce_dice(np.asarray(y_pr3), np.asarray(y_gt3))
    assert np.allclose(float(loss3), ref3, rtol=1e-5, atol=1e-5), (float(loss3), ref3)

    print("KERNEL_OK")
</pallas_src>

<mosaic_0001>
module attributes {stable_mosaic.version = 11 : i64} {
  func.func @_bce_dice_kernel(%arg0: i32, %arg1: i32, %arg2: memref<8x256xf32, #tpu.memory_space<vmem>>, %arg3: memref<8x256xf32, #tpu.memory_space<vmem>>, %arg4: memref<256x1xf32, #tpu.memory_space<vmem>>, %arg5: memref<8x1xf32, #tpu.memory_space<vmem>>, %arg6: memref<8x1xf32, #tpu.memory_space<vmem>>, %arg7: memref<8x1xf32, #tpu.memory_space<vmem>>, %arg8: memref<8x1xf32, #tpu.memory_space<vmem>>) attributes {dimension_semantics = [#tpu.dimension_semantics<parallel>, #tpu.dimension_semantics<arbitrary>], iteration_bounds = array<i64: 1, 1>, scalar_prefetch = 0 : i64, scratch_operands = 0 : i64, tpu.core_type = #tpu.core_type<tc>, window_params = [{transform_indices = @transform_0, window_bounds = array<i64: 8, 256>}, {transform_indices = @transform_1, window_bounds = array<i64: 8, 256>}, {pipeline_mode = #tpu.pipeline_mode<synchronous>, transform_indices = @transform_2, window_bounds = array<i64: 256, 1>}, {transform_indices = @transform_3, window_bounds = array<i64: 8, 1>}, {transform_indices = @transform_4, window_bounds = array<i64: 8, 1>}, {transform_indices = @transform_5, window_bounds = array<i64: 8, 1>}, {transform_indices = @transform_6, window_bounds = array<i64: 8, 1>}]} {
    %c0_i32 = arith.constant 0 : i32
    %0 = arith.cmpi eq, %arg1, %c0_i32 : i32
    %1 = arith.extui %0 : i1 to i32
    %c0_i32_0 = arith.constant 0 : i32
    %2 = arith.cmpi ne, %1, %c0_i32_0 : i32
    scf.if %2 {
      %cst_28 = arith.constant 0.000000e+00 : f32
      %37 = vector.broadcast %cst_28 : f32 to vector<8x1xf32>
      %c0_29 = arith.constant 0 : index
      %c0_30 = arith.constant 0 : index
      %38 = vector.load %arg5[%c0_29, %c0_30] : memref<8x1xf32, #tpu.memory_space<vmem>>, vector<8x1xf32>
      tpu.vector_store %arg5[%c0_29, %c0_30], %37 {strides = array<i32>} : memref<8x1xf32, #tpu.memory_space<vmem>>, vector<8x1xf32>,
      %cst_31 = arith.constant 0.000000e+00 : f32
      %39 = vector.broadcast %cst_31 : f32 to vector<8x1xf32>
      %c0_32 = arith.constant 0 : index
      %c0_33 = arith.constant 0 : index
      %40 = vector.load %arg6[%c0_32, %c0_33] : memref<8x1xf32, #tpu.memory_space<vmem>>, vector<8x1xf32>
      tpu.vector_store %arg6[%c0_32, %c0_33], %39 {strides = array<i32>} : memref<8x1xf32, #tpu.memory_space<vmem>>, vector<8x1xf32>,
      %cst_34 = arith.constant 0.000000e+00 : f32
      %41 = vector.broadcast %cst_34 : f32 to vector<8x1xf32>
      %c0_35 = arith.constant 0 : index
      %c0_36 = arith.constant 0 : index
      %42 = vector.load %arg7[%c0_35, %c0_36] : memref<8x1xf32, #tpu.memory_space<vmem>>, vector<8x1xf32>
      tpu.vector_store %arg7[%c0_35, %c0_36], %41 {strides = array<i32>} : memref<8x1xf32, #tpu.memory_space<vmem>>, vector<8x1xf32>,
      %cst_37 = arith.constant 0.000000e+00 : f32
      %43 = vector.broadcast %cst_37 : f32 to vector<8x1xf32>
      %c0_38 = arith.constant 0 : index
      %c0_39 = arith.constant 0 : index
      %44 = vector.load %arg8[%c0_38, %c0_39] : memref<8x1xf32, #tpu.memory_space<vmem>>, vector<8x1xf32>
      tpu.vector_store %arg8[%c0_38, %c0_39], %43 {strides = array<i32>} : memref<8x1xf32, #tpu.memory_space<vmem>>, vector<8x1xf32>,
    } else {
    }
    %c0 = arith.constant 0 : index
    %c0_1 = arith.constant 0 : index
    %3 = vector.load %arg2[%c0, %c0_1] : memref<8x256xf32, #tpu.memory_space<vmem>>, vector<8x256xf32>
    %c0_2 = arith.constant 0 : index
    %c0_3 = arith.constant 0 : index
    %4 = vector.load %arg3[%c0_2, %c0_3] : memref<8x256xf32, #tpu.memory_space<vmem>>, vector<8x256xf32>
    %cst = arith.constant 0.000000e+00 : f32
    %5 = vector.broadcast %cst : f32 to vector<8x256xf32>
    %6 = arith.cmpf ogt, %3, %5 : vector<8x256xf32>
    %7 = arith.extui %6 : vector<8x256xi1> to vector<8x256xi32>
    %8 = arith.sitofp %7 : vector<8x256xi32> to vector<8x256xf32>
    %cst_4 = arith.constant 0.000000e+00 : f32
    %9 = vector.broadcast %cst_4 : f32 to vector<8x256xf32>
    %10 = arith.maximumf %3, %9 : vector<8x256xf32>
    %11 = arith.mulf %3, %4 : vector<8x256xf32>
    %12 = arith.subf %10, %11 : vector<8x256xf32>
    %13 = math.absf %3 : vector<8x256xf32>
    %cst_5 = arith.constant 0.000000e+00 : f32
    %14 = vector.broadcast %cst_5 : f32 to vector<8x256xf32>
    %15 = arith.subf %14, %13 : vector<8x256xf32>
    %16 = math.exp %15 : vector<8x256xf32>
    %17 = math.log1p %16 : vector<8x256xf32>
    %18 = arith.addf %12, %17 : vector<8x256xf32>
    %c0_6 = arith.constant 0 : index
    %c0_7 = arith.constant 0 : index
    %19 = vector.load %arg4[%c0_6, %c0_7] : memref<256x1xf32, #tpu.memory_space<vmem>>, vector<256x1xf32>
    %c0_8 = arith.constant 0 : index
    %c0_9 = arith.constant 0 : index
    %20 = vector.load %arg5[%c0_8, %c0_9] : memref<8x1xf32, #tpu.memory_space<vmem>>, vector<8x1xf32>
    %21 = arith.mulf %8, %4 : vector<8x256xf32>
    %cst_10 = arith.constant dense<0.000000e+00> : vector<8x1xf32>
    %22 = tpu.matmul %21, %19, %cst_10 {dimension_numbers = #tpu.dot_dimension_numbers<[1], [0], [0], [1], [0, 0, 1, 1], [], []>} : vector<8x256xf32>, vector<256x1xf32>, vector<8x1xf32> -> vector<8x1xf32>
    %23 = arith.addf %20, %22 : vector<8x1xf32>
    %c0_11 = arith.constant 0 : index
    %c0_12 = arith.constant 0 : index
    %24 = vector.load %arg5[%c0_11, %c0_12] : memref<8x1xf32, #tpu.memory_space<vmem>>, vector<8x1xf32>
    tpu.vector_store %arg5[%c0_11, %c0_12], %23 {strides = array<i32>} : memref<8x1xf32, #tpu.memory_space<vmem>>, vector<8x1xf32>,
    %c0_13 = arith.constant 0 : index
    %c0_14 = arith.constant 0 : index
    %25 = vector.load %arg6[%c0_13, %c0_14] : memref<8x1xf32, #tpu.memory_space<vmem>>, vector<8x1xf32>
    %cst_15 = arith.constant dense<0.000000e+00> : vector<8x1xf32>
    %26 = tpu.matmul %4, %19, %cst_15 {dimension_numbers = #tpu.dot_dimension_numbers<[1], [0], [0], [1], [0, 0, 1, 1], [], []>} : vector<8x256xf32>, vector<256x1xf32>, vector<8x1xf32> -> vector<8x1xf32>
    %27 = arith.addf %25, %26 : vector<8x1xf32>
    %c0_16 = arith.constant 0 : index
    %c0_17 = arith.constant 0 : index
    %28 = vector.load %arg6[%c0_16, %c0_17] : memref<8x1xf32, #tpu.memory_space<vmem>>, vector<8x1xf32>
    tpu.vector_store %arg6[%c0_16, %c0_17], %27 {strides = array<i32>} : memref<8x1xf32, #tpu.memory_space<vmem>>, vector<8x1xf32>,
    %c0_18 = arith.constant 0 : index
    %c0_19 = arith.constant 0 : index
    %29 = vector.load %arg7[%c0_18, %c0_19] : memref<8x1xf32, #tpu.memory_space<vmem>>, vector<8x1xf32>
    %cst_20 = arith.constant dense<0.000000e+00> : vector<8x1xf32>
    %30 = tpu.matmul %8, %19, %cst_20 {dimension_numbers = #tpu.dot_dimension_numbers<[1], [0], [0], [1], [0, 0, 1, 1], [], []>} : vector<8x256xf32>, vector<256x1xf32>, vector<8x1xf32> -> vector<8x1xf32>
    %31 = arith.addf %29, %30 : vector<8x1xf32>
    %c0_21 = arith.constant 0 : index
    %c0_22 = arith.constant 0 : index
    %32 = vector.load %arg7[%c0_21, %c0_22] : memref<8x1xf32, #tpu.memory_space<vmem>>, vector<8x1xf32>
    tpu.vector_store %arg7[%c0_21, %c0_22], %31 {strides = array<i32>} : memref<8x1xf32, #tpu.memory_space<vmem>>, vector<8x1xf32>,
    %c0_23 = arith.constant 0 : index
    %c0_24 = arith.constant 0 : index
    %33 = vector.load %arg8[%c0_23, %c0_24] : memref<8x1xf32, #tpu.memory_space<vmem>>, vector<8x1xf32>
    %cst_25 = arith.constant dense<0.000000e+00> : vector<8x1xf32>
    %34 = tpu.matmul %18, %19, %cst_25 {dimension_numbers = #tpu.dot_dimension_numbers<[1], [0], [0], [1], [0, 0, 1, 1], [], []>} : vector<8x256xf32>, vector<256x1xf32>, vector<8x1xf32> -> vector<8x1xf32>
    %35 = arith.addf %33, %34 : vector<8x1xf32>
    %c0_26 = arith.constant 0 : index
    %c0_27 = arith.constant 0 : index
    %36 = vector.load %arg8[%c0_26, %c0_27] : memref<8x1xf32, #tpu.memory_space<vmem>>, vector<8x1xf32>
    tpu.vector_store %arg8[%c0_26, %c0_27], %35 {strides = array<i32>} : memref<8x1xf32, #tpu.memory_space<vmem>>, vector<8x1xf32>,
    return
  }
  func.func @transform_0(%arg0: i32, %arg1: i32) -> (i32, i32) {
    %c0_i32 = arith.constant 0 : i32
    return %arg0, %arg1 : i32, i32
  }
  func.func @transform_1(%arg0: i32, %arg1: i32) -> (i32, i32) {
    %c0_i32 = arith.constant 0 : i32
    return %arg0, %arg1 : i32, i32
  }
  func.func @transform_2(%arg0: i32, %arg1: i32) -> (i32, i32) {
    %c0_i32 = arith.constant 0 : i32
    %c0_i32_0 = arith.constant 0 : i32
    %c0_i32_1 = arith.constant 0 : i32
    return %c0_i32, %c0_i32_0 : i32, i32
  }
  func.func @transform_3(%arg0: i32, %arg1: i32) -> (i32, i32) {
    %c0_i32 = arith.constant 0 : i32
    %c0_i32_0 = arith.constant 0 : i32
    return %arg0, %c0_i32 : i32, i32
  }
  func.func @transform_4(%arg0: i32, %arg1: i32) -> (i32, i32) {
    %c0_i32 = arith.constant 0 : i32
    %c0_i32_0 = arith.constant 0 : i32
    return %arg0, %c0_i32 : i32, i32
  }
  func.func @transform_5(%arg0: i32, %arg1: i32) -> (i32, i32) {
    %c0_i32 = arith.constant 0 : i32
    %c0_i32_0 = arith.constant 0 : i32
    return %arg0, %c0_i32 : i32, i32
  }
  func.func @transform_6(%arg0: i32, %arg1: i32) -> (i32, i32) {
    %c0_i32 = arith.constant 0 : i32
    %c0_i32_0 = arith.constant 0 : i32
    return %arg0, %c0_i32 : i32, i32
  }
}

</mosaic_0001>

<bundles_post_ra>
// kernel: tpu_custom_call.1
= control target key start
LH: loop header
LB: loop body
LE: loop exit
PB: predicated region body
PF: predicated region fallthrough
CT: control target
= control target key end

     0   :  { %v308_v56 = vmov 0.0   ;;  %vm22_vm4 = vcmask 7168   ;;  %s733_s2 = inlined_call_operand.vmem [shape: f32[256,1], index: 2, kind: input, shape index: {}]   ;;  %s734_s0 = inlined_call_operand.vmem [shape: f32[8,256], index: 0, kind: input, shape index: {}]   ;;  %s735_s1 = inlined_call_operand.vmem [shape: f32[8,256], index: 1, kind: input, shape index: {}]   ;;  %s736_s3 = inlined_call_operand.vmem [shape: f32[8,1], index: 3, kind: output, shape index: {0}]   ;;  %s737_s4 = inlined_call_operand.vmem [shape: f32[8,1], index: 4, kind: output, shape index: {1}]   ;;  %s738_s5 = inlined_call_operand.vmem [shape: f32[8,1], index: 5, kind: output, shape index: {2}]   ;;  %s739_s6 = inlined_call_operand.vmem [shape: f32[8,1], index: 6, kind: output, shape index: {3}]  }
   0x1   :  { %v348_v0 = vld [vmem:[%s733_s2 + $0x78] sm:$0xff]  ;;  %v358_v2 = vld [vmem:[%s733_s2 + $0x70] sm:$0xff]  ;;  %v370_v4 = vld [vmem:[%s733_s2 + $0x68] sm:$0xff]  ;;  %23 = vst.msk [vmem:[%s736_s3] sm:$0xff] %vm22_vm4, %v308_v56 }
   0x2   :  { %v353_v1 = vld [vmem:[%s733_s2 + $0xf8] sm:$0xff]  ;;  %150 = vmatpush.msra.mxu2 %v348_v0  ;;  %v365_v3 = vld [vmem:[%s733_s2 + $0xf0] sm:$0xff]  ;;  %v375_v5 = vld [vmem:[%s733_s2 + $0xe8] sm:$0xff]  ;;  %106 = vmatpush.msra.mxu0 %v348_v0  ;;  %24 = vst.msk [vmem:[%s737_s4] sm:$0xff] %vm22_vm4, %v308_v56 }
   0x3   :  { %170 = vmatpush.msra.mxu3 %v353_v1  ;;  %126 = vmatpush.msra.mxu1 %v353_v1  ;;  %v384_v6 = vld [vmem:[%s733_s2 + $0x60] sm:$0xff]  ;;  %v398_v8 = vld [vmem:[%s733_s2 + $0x58] sm:$0xff]  ;;  %v412_v10 = vld [vmem:[%s733_s2 + $0x50] sm:$0xff]  ;;  %25 = vst.msk [vmem:[%s738_s5] sm:$0xff] %vm22_vm4, %v308_v56 }
   0x4   :  { %151 = vmatpush.msra.mxu2 %v358_v2  ;;  %v389_v7 = vld [vmem:[%s733_s2 + $0xe0] sm:$0xff]  ;;  %107 = vmatpush.msra.mxu0 %v358_v2  ;;  %v403_v9 = vld [vmem:[%s733_s2 + $0xd8] sm:$0xff]  ;;  %v417_v11 = vld [vmem:[%s733_s2 + $0xd0] sm:$0xff]  ;;  %26 = vst.msk [vmem:[%s739_s6] sm:$0xff] %vm22_vm4, %v308_v56 }
   0x5   :  { %171 = vmatpush.msra.mxu3 %v365_v3  ;;  %127 = vmatpush.msra.mxu1 %v365_v3  ;;  %v426_v12 = vld [vmem:[%s733_s2 + $0x48] sm:$0xff]  ;;  %v440_v14 = vld [vmem:[%s733_s2 + $0x40] sm:$0xff]  ;;  %v454_v16 = vld [vmem:[%s733_s2 + $0x38] sm:$0xff] }
   0x6   :  { %152 = vmatpush.msra.mxu2 %v370_v4  ;;  %108 = vmatpush.msra.mxu0 %v370_v4  ;;  %v431_v13 = vld [vmem:[%s733_s2 + $0xc8] sm:$0xff]  ;;  %v445_v15 = vld [vmem:[%s733_s2 + $0xc0] sm:$0xff]  ;;  %v459_v17 = vld [vmem:[%s733_s2 + $0xb8] sm:$0xff] }
   0x7   :  { %172 = vmatpush.msra.mxu3 %v375_v5  ;;  %128 = vmatpush.msra.mxu1 %v375_v5  ;;  %v468_v18 = vld [vmem:[%s734_s0] sm:$0xff]  ;;  %v473_v19 = vld [vmem:[%s733_s2 + $0x30] sm:$0xff]  ;;  %v485_v21 = vld [vmem:[%s734_s0 + $0x8] sm:$0xff] }
   0x8   :  { %153 = vmatpush.msra.mxu2 %v384_v6  ;;  %109 = vmatpush.msra.mxu0 %v384_v6  ;;  %v478_v20 = vld [vmem:[%s733_s2 + $0xb0] sm:$0xff]  ;;  %v492_v22 = vld [vmem:[%s733_s2 + $0x28] sm:$0xff]  ;;  %v43_v24 = vand.u32 2147483647, %v468_v18  ;;  %v44_v25 = vand.u32 2147483647, %v485_v21 }
   0x9   :  { %173 = vmatpush.msra.mxu3 %v389_v7  ;;  %129 = vmatpush.msra.mxu1 %v389_v7  ;;  %v497_v23 = vld [vmem:[%s733_s2 + $0xa8] sm:$0xff]  ;;  %v508_v26 = vld [vmem:[%s733_s2 + $0x20] sm:$0xff]  ;;  %v522_v28 = vld [vmem:[%s733_s2 + $0x18] sm:$0xff]  ;;  %vm31_vm0 = vcmp.gt.f32.partialorder %v468_v18, 0.0  ;;  %vm32_vm1 = vcmp.gt.f32.partialorder %v485_v21, 0.0  ;;  %v37_v58 = vmax.f32 %v468_v18, 0.0 }
   0xa   :  { %154 = vmatpush.msra.mxu2 %v398_v8  ;;  %110 = vmatpush.msra.mxu0 %v398_v8  ;;  %v513_v27 = vld [vmem:[%s733_s2 + $0xa0] sm:$0xff]  ;;  %v527_v29 = vld [vmem:[%s733_s2 + $0x98] sm:$0xff]  ;;  %v45_v30 = vsub.f32 0.0, %v43_v24  ;;  %v46_v31 = vsub.f32 0.0, %v44_v25  ;;  %v536_v32 = vld [vmem:[%s733_s2 + $0x10] sm:$0xff]  ;;  %v294_v57 = vsel %vm31_vm0, 1.0, %v308_v56 }
   0xb   :  { %174 = vmatpush.msra.mxu3 %v403_v9  ;;  %130 = vmatpush.msra.mxu1 %v403_v9  ;;  %v541_v33 = vld [vmem:[%s733_s2 + $0x90] sm:$0xff]  ;;  %v550_v34 = vld [vmem:[%s733_s2 + $0x8] sm:$0xff]  ;;  %v564_v38 = vld [vmem:[%s733_s2] sm:$0xff]  ;;  %v38_v59 = vmax.f32 %v485_v21, 0.0 }
   0xc   :  { %155 = vmatpush.msra.mxu2 %v412_v10  ;;  %111 = vmatpush.msra.mxu0 %v412_v10  ;;  %v555_v35 = vld [vmem:[%s733_s2 + $0x88] sm:$0xff]  ;;  %v47_v36 = vmul.f32 1.442695, %v45_v30  ;;  %v49_v37 = vmul.f32 1.442695, %v46_v31  ;;  %v569_v39 = vld [vmem:[%s733_s2 + $0x80] sm:$0xff] }
   0xd   :  { %175 = vmatpush.msra.mxu3 %v417_v11  ;;  %131 = vmatpush.msra.mxu1 %v417_v11  ;;  %v29_v50 = vld [vmem:[%s735_s1] sm:$0xff]  ;;  %v30_v51 = vld [vmem:[%s735_s1 + $0x8] sm:$0xff] }
   0xe   :  { %156 = vmatpush.msra.mxu2 %v426_v12  ;;  %112 = vmatpush.msra.mxu0 %v426_v12  ;;  %300 = vpow2.f32 %v47_v36  ;;  %v39_v54 = vmul.f32 %v29_v50, %v468_v18  ;;  %v40_v55 = vmul.f32 %v30_v51, %v485_v21 }
   0xf   :  { %176 = vmatpush.msra.mxu3 %v431_v13  ;;  %132 = vmatpush.msra.mxu1 %v431_v13  ;;  %302 = vpow2.f32 %v49_v37 }
  0x10   :  { %157 = vmatpush.msra.mxu2 %v440_v14  ;;  %113 = vmatpush.msra.mxu0 %v440_v14 }
  0x11   :  { %177 = vmatpush.msra.mxu3 %v445_v15  ;;  %133 = vmatpush.msra.mxu1 %v445_v15 }
  0x12   :  { %158 = vmatpush.msra.mxu2 %v454_v16  ;;  %114 = vmatpush.msra.mxu0 %v454_v16 }
  0x13   :  { %178 = vmatpush.msra.mxu3 %v459_v17  ;;  %134 = vmatpush.msra.mxu1 %v459_v17 }
  0x14   :  { %159 = vmatpush.msra.mxu2 %v473_v19  ;;  %115 = vmatpush.msra.mxu0 %v473_v19  ;;  %v587_v40 = vpop.eup %300 }
  0x15   :  { %179 = vmatpush.msra.mxu3 %v478_v20  ;;  %135 = vmatpush.msra.mxu1 %v478_v20  ;;  %v591_v41 = vpop.eup %302  ;;  %v51_v42 = vadd.f32 1.0, %v587_v40  ;;  %v54_v44 = vmul.f32 -0.5, %v587_v40  ;;  %v57_v52 = vand.u32 2147483647, %v587_v40 }
  0x16   :  { %160 = vmatpush.msra.mxu2 %v492_v22  ;;  %116 = vmatpush.msra.mxu0 %v492_v22  ;;  %v60_v43 = vadd.f32 1.0, %v591_v41  ;;  %v63_v45 = vmul.f32 -0.5, %v591_v41  ;;  %v66_v53 = vand.u32 2147483647, %v591_v41 }
  0x17   :  { %180 = vmatpush.msra.mxu3 %v497_v23  ;;  %136 = vmatpush.msra.mxu1 %v497_v23  ;;  %304 = vlog2.f32 %v51_v42  ;;  %v55_v47 = vadd.f32 1.0, %v54_v44  ;;  %vm651_vm2 = vcmp.lt.f32.partialorder %v57_v52, 0.0004427343 }
  0x18   :  { %161 = vmatpush.msra.mxu2 %v508_v26  ;;  %117 = vmatpush.msra.mxu0 %v508_v26  ;;  %306 = vlog2.f32 %v60_v43  ;;  %v64_v48 = vadd.f32 1.0, %v63_v45  ;;  %vm655_vm3 = vcmp.lt.f32.partialorder %v66_v53, 0.0004427343 }
  0x19   :  { %181 = vmatpush.msra.mxu3 %v513_v27  ;;  %137 = vmatpush.msra.mxu1 %v513_v27  ;;  %v56_v61 = vmul.f32 %v587_v40, %v55_v47 }
  0x1a   :  { %162 = vmatpush.msra.mxu2 %v522_v28  ;;  %118 = vmatpush.msra.mxu0 %v522_v28  ;;  %v65_v63 = vmul.f32 %v591_v41, %v64_v48 }
  0x1b   :  { %182 = vmatpush.msra.mxu3 %v527_v29  ;;  %138 = vmatpush.msra.mxu1 %v527_v29 }
  0x1c   :  { %163 = vmatpush.msra.mxu2 %v536_v32  ;;  %119 = vmatpush.msra.mxu0 %v536_v32 }
  0x1d   :  { %183 = vmatpush.msra.mxu3 %v541_v33  ;;  %139 = vmatpush.msra.mxu1 %v541_v33  ;;  %v305_v46 = vpop.eup %304 }
  0x1e   :  { %164 = vmatpush.msra.mxu2 %v550_v34  ;;  %120 = vmatpush.msra.mxu0 %v550_v34  ;;  %v307_v49 = vpop.eup %306  ;;  %v53_v60 = vmul.f32 0.6931472, %v305_v46 }
  0x1f   :  { %184 = vmatpush.msra.mxu3 %v555_v35  ;;  %140 = vmatpush.msra.mxu1 %v555_v35  ;;  %v62_v62 = vmul.f32 0.6931472, %v307_v49 }
  0x20   :  { %165 = vmatpush.msra.mxu2 %v564_v38  ;;  %121 = vmatpush.msra.mxu0 %v564_v38 }
  0x21   :  { %185 = vmatpush.msra.mxu3 %v569_v39  ;;  %141 = vmatpush.msra.mxu1 %v569_v39 }
  0x22   :  { %236 = vmatpush.msrb.mxu2 %v348_v0  ;;  %193 = vmatpush.msrb.mxu0 %v348_v0  ;;  %v295_v0 = vsel %vm32_vm1, 1.0, %v308_v56 }
  0x23   :  { %256 = vmatpush.msrb.mxu3 %v353_v1  ;;  %213 = vmatpush.msrb.mxu1 %v353_v1 }
  0x24   :  { %237 = vmatpush.msrb.mxu2 %v358_v2  ;;  %194 = vmatpush.msrb.mxu0 %v358_v2 }
  0x25   :  { %257 = vmatpush.msrb.mxu3 %v365_v3  ;;  %214 = vmatpush.msrb.mxu1 %v365_v3  ;;  %v104_v3 = vmul.f32 %v294_v57, %v29_v50 }
  0x26   :  { %238 = vmatpush.msrb.mxu2 %v370_v4  ;;  %195 = vmatpush.msrb.mxu0 %v370_v4  ;;  %v41_v4 = vsub.f32 %v37_v58, %v39_v54 }
  0x27   :  { %258 = vmatpush.msrb.mxu3 %v375_v5  ;;  %215 = vmatpush.msrb.mxu1 %v375_v5  ;;  %v42_v5 = vsub.f32 %v38_v59, %v40_v55 }
  0x28   :  { %239 = vmatpush.msrb.mxu2 %v384_v6  ;;  %196 = vmatpush.msrb.mxu0 %v384_v6  ;;  %v105_v6 = vmul.f32 %v295_v0, %v30_v51 }
  0x29   :  { %259 = vmatpush.msrb.mxu3 %v389_v7  ;;  %216 = vmatpush.msrb.mxu1 %v389_v7  ;;  %v59_v7 = vsel %vm651_vm2, %v56_v61, %v53_v60 }
  0x2a   :  { %240 = vmatpush.msrb.mxu2 %v398_v8  ;;  %197 = vmatpush.msrb.mxu0 %v398_v8  ;;  %v68_v8 = vsel %vm655_vm3, %v65_v63, %v62_v62 }
  0x2b   :  { %260 = vmatpush.msrb.mxu3 %v403_v9  ;;  %217 = vmatpush.msrb.mxu1 %v403_v9  ;;  %v69_v9 = vadd.f32 %v59_v7, %v41_v4 }
  0x2c   :  { %241 = vmatpush.msrb.mxu2 %v412_v10  ;;  %198 = vmatpush.msrb.mxu0 %v412_v10  ;;  %v70_v10 = vadd.f32 %v68_v8, %v42_v5 }
  0x2d   :  { %261 = vmatpush.msrb.mxu3 %v417_v11  ;;  %218 = vmatpush.msrb.mxu1 %v417_v11  ;;  %v309_v11 = vmov 1.0  }
  0x2e   :  { %242 = vmatpush.msrb.mxu2 %v426_v12  ;;  %199 = vmatpush.msrb.mxu0 %v426_v12 }
  0x2f   :  { %262 = vmatpush.msrb.mxu3 %v431_v13  ;;  %219 = vmatpush.msrb.mxu1 %v431_v13  ;;  %v149_v13 = vld [vmem:[%s737_s4] sm:$0xff] }
  0x30   :  { %243 = vmatpush.msrb.mxu2 %v440_v14  ;;  %200 = vmatpush.msrb.mxu0 %v440_v14 }
  0x31   :  { %263 = vmatpush.msrb.mxu3 %v445_v15  ;;  %220 = vmatpush.msrb.mxu1 %v445_v15 }
  0x32   :  { %244 = vmatpush.msrb.mxu2 %v454_v16  ;;  %201 = vmatpush.msrb.mxu0 %v454_v16 }
  0x33   :  { %264 = vmatpush.msrb.mxu3 %v459_v17  ;;  %221 = vmatpush.msrb.mxu1 %v459_v17  ;;  %v103_v17 = vld [vmem:[%s736_s3] sm:$0xff] }
  0x34   :  { %245 = vmatpush.msrb.mxu2 %v473_v19  ;;  %186 = vmatmul.f32.vlgmr.msra.gmra.mxu3 %v30_v51 }
  0x35   :  { %265 = vmatpush.msrb.mxu3 %v478_v20  ;;  %166 = vmatmul.f32.vlgmr.msra.gmra.mxu2 %v29_v50 }
  0x36   :  { %246 = vmatpush.msrb.mxu2 %v492_v22  ;;  %202 = vmatpush.msrb.mxu0 %v473_v19 }
  0x37   :  { %266 = vmatpush.msrb.mxu3 %v497_v23  ;;  %222 = vmatpush.msrb.mxu1 %v478_v20 }
  0x38   :  { %247 = vmatpush.msrb.mxu2 %v508_v26  ;;  %203 = vmatpush.msrb.mxu0 %v492_v22 }
  0x39   :  { %267 = vmatpush.msrb.mxu3 %v513_v27  ;;  %223 = vmatpush.msrb.mxu1 %v497_v23  ;;  %v192_v23 = vld [vmem:[%s738_s5] sm:$0xff] }
  0x3a   :  { %248 = vmatpush.msrb.mxu2 %v522_v28  ;;  %204 = vmatpush.msrb.mxu0 %v508_v26 }
  0x3b   :  { %268 = vmatpush.msrb.mxu3 %v527_v29  ;;  %224 = vmatpush.msrb.mxu1 %v513_v27  ;;  %v235_v27 = vld [vmem:[%s739_s6] sm:$0xff] }
  0x3c   :  { %249 = vmatpush.msrb.mxu2 %v536_v32  ;;  %122 = vmatmul.f32.vlgmr.msra.gmra.mxu0 %v104_v3 }
  0x3d   :  { %269 = vmatpush.msrb.mxu3 %v541_v33  ;;  %142 = vmatmul.f32.vlgmr.msra.gmra.mxu1 %v105_v6 }
  0x3e   :  { %250 = vmatpush.msrb.mxu2 %v550_v34  ;;  %205 = vmatpush.msrb.mxu0 %v522_v28 }
  0x3f   :  { %270 = vmatpush.msrb.mxu3 %v555_v35  ;;  %225 = vmatpush.msrb.mxu1 %v527_v29 }
  0x40   :  { %251 = vmatpush.msrb.mxu2 %v564_v38  ;;  %206 = vmatpush.msrb.mxu0 %v536_v32 }
  0x41   :  { %271 = vmatpush.msrb.mxu3 %v569_v39  ;;  %252 = vmatmul.f32.vlgmr.msrb.gmra.mxu2 %v69_v9 }
  0x42   :  { %272 = vmatmul.f32.vlgmr.msrb.gmra.mxu3 %v70_v10  ;;  %226 = vmatpush.msrb.mxu1 %v541_v33 }
  0x43   :  { %207 = vmatpush.msrb.mxu0 %v550_v34 }
  0x44   :  { %227 = vmatpush.msrb.mxu1 %v555_v35 }
  0x45   :  { %208 = vmatpush.msrb.mxu0 %v564_v38 }
  0x46   :  { %228 = vmatpush.msrb.mxu1 %v569_v39  ;;  %296 = vmatmul.msk.f32.vlgmr.msrb.gmra.mxu0 %vm31_vm0, %v309_v11 }
  0x47   :  { %297 = vmatmul.msk.f32.vlgmr.msrb.gmra.mxu1 %vm32_vm1, %v309_v11 }
  0xb7   :  { %v187_v14 = vpop.f32.mrf.mxu3 }
  0xb8   :  { %v167_v12 = vpop.f32.mrf.mxu2 }
  0xb9   :  { %v188_v15 = vadd.f32 %v187_v14, %v167_v12  ;;  %v123_v16 = vpop.f32.mrf.mxu0 }
  0xba   :  { %v143_v18 = vpop.f32.mrf.mxu1 }
  0xbb   :  { %v144_v19 = vadd.f32 %v143_v18, %v123_v16  ;;  %v190_v20 = vadd.f32 %v188_v15, %v149_v13 }
  0xbd   :  { %v146_v21 = vadd.f32 %v144_v19, %v103_v17  ;;  %191 = vst.msk [vmem:[%s737_s4] sm:$0xff] %vm22_vm4, %v190_v20 }
  0xbf   :  { %148 = vst.msk [vmem:[%s736_s3] sm:$0xff] %vm22_vm4, %v146_v21 }
  0xc3   :  { %v210_v22 = vpop.f32.mrf.mxu0 }
  0xc4   :  { %v230_v24 = vpop.f32.mrf.mxu1  ;;  %v253_v26 = vpop.f32.mrf.mxu2 }
  0xc5   :  { %v231_v25 = vadd.f32 %v230_v24, %v210_v22  ;;  %v273_v28 = vpop.f32.mrf.mxu3 }
  0xc6   :  { %v274_v29 = vadd.f32 %v273_v28, %v253_v26 }
  0xc7   :  { %v233_v30 = vadd.f32 %v231_v25, %v192_v23 }
  0xc8   :  { %v276_v31 = vadd.f32 %v274_v29, %v235_v27 }
  0xc9   :  { %234 = vst.msk [vmem:[%s738_s5] sm:$0xff] %vm22_vm4, %v233_v30 }
  0xca   :  { %277 = vst.msk [vmem:[%s739_s6] sm:$0xff] %vm22_vm4, %v276_v31 }

</bundles_post_ra>
